<compile_context>
chip_gen: v5e
topology: v5e:2x2
jax: 0.10.0
libtpu: 0.0.40
codegen_flags: <defaults>
</compile_context>

<pallas_src>
import jax
import jax.numpy as jnp
from jax import lax
from jax.experimental import pallas as pl
from jax.experimental.pallas import tpu as pltpu


def _round_up(x, m):
    return ((x + m - 1) // m) * m


def regression_head_kernel(x_ref, w1_ref, b1_ref, w2_ref, b2_ref, o_ref):
    # x_ref:  [TM, H]   row tile of flattened features (VMEM, double-buffered)
    # w1_ref: [H, H]    dense weight, native PyTorch (out, in) layout (resident)
    # b1_ref: [1, H]
    # w2_ref: [Lp, H]   out_proj weight, (out, in), zero-padded to Lp rows
    # b2_ref: [1, Lp]
    # o_ref:  [TM, Lp]  lane-dense output tile
    x = x_ref[...]
    # Contract x's last dim against the weights' last (in) dim -> no wrapper .T
    dn = (((1,), (1,)), ((), ()))
    h = lax.dot_general(x, w1_ref[...], dn, preferred_element_type=jnp.float32)
    h = jnp.tanh(h + b1_ref[...])
    y = lax.dot_general(h.astype(w2_ref.dtype), w2_ref[...], dn,
                        preferred_element_type=jnp.float32) + b2_ref[...]
    o_ref[...] = y.astype(o_ref.dtype)


def _pick_tm(m_rows, H, L_pad, dtype_bytes=4, budget_bytes=24 * 1024 * 1024):
    """Largest row tile (multiple of 8, <=512) whose double-buffered tiles plus
    resident weights fit comfortably inside the default scoped-VMEM budget."""
    resident = (H * H + H * L_pad + H + L_pad) * dtype_bytes
    per_row = 2 * (H + L_pad) * dtype_bytes  # double-buffered x tile + out tile
    avail = max(budget_bytes - resident, per_row * 8)
    tm = max(8, min(512, (avail // per_row) // 8 * 8))
    m8 = _round_up(max(m_rows, 1), 8)
    return min(tm, m8)


def regression_head(features, w_dense, b_dense, w_out, b_out):
    """features: [..., H].  Weights in PyTorch layout:
       w_dense [H, H], b_dense [H], w_out [L, H], b_out [L]."""
    orig_shape = features.shape
    H = orig_shape[-1]
    L = w_out.shape[0]

    x2d = features.reshape(-1, H)
    M = x2d.shape[0]

    # Lane-dense output: pad num_labels up to a multiple of 128 with zeros.
    L_pad = _round_up(L, 128)
    if L_pad != L:
        w2 = jnp.zeros((L_pad, H), w_out.dtype).at[:L].set(w_out)
        b2 = jnp.zeros((L_pad,), b_out.dtype).at[:L].set(b_out)
    else:
        w2, b2 = w_out, b_out
    b1 = b_dense.reshape(1, H)
    b2 = b2.reshape(1, L_pad)

    # Row tiling: pad M to a multiple of TM (TM is a multiple of 8).
    TM = _pick_tm(M, H, L_pad)
    M_pad = _round_up(M, TM)
    if M_pad != M:
        x2d = jnp.zeros((M_pad, H), x2d.dtype).at[:M].set(x2d)

    grid = (M_pad // TM,)

    cost = pl.CostEstimate(
        flops=2 * M_pad * (H * H + H * L_pad),
        transcendentals=M_pad * H,
        bytes_accessed=4 * (M_pad * H + H * H + H * L_pad + M_pad * L_pad),
    )

    out2d = pl.pallas_call(
        regression_head_kernel,
        out_shape=jax.ShapeDtypeStruct((M_pad, L_pad), features.dtype),
        grid=grid,
        in_specs=[
            pl.BlockSpec((TM, H), lambda i: (i, 0)),      # streamed row tile
            pl.BlockSpec((H, H), lambda i: (0, 0)),       # resident dense W
            pl.BlockSpec((1, H), lambda i: (0, 0)),       # resident dense b
            pl.BlockSpec((L_pad, H), lambda i: (0, 0)),   # resident out_proj W
            pl.BlockSpec((1, L_pad), lambda i: (0, 0)),   # resident out_proj b
        ],
        out_specs=pl.BlockSpec((TM, L_pad), lambda i: (i, 0)),
        compiler_params=pltpu.CompilerParams(
            dimension_semantics=("parallel",)),
        cost_estimate=cost,
    )(x2d, w_dense, b1, w2, b2)

    out2d = out2d[:M, :L]
    return out2d.reshape(*orig_shape[:-1], L)


if __name__ == "__main__":
    # Config: hidden_size=32, num_labels=4, batch=2, seq=8.
    B, S, H, L = 2, 8, 32, 4

    key = jax.random.PRNGKey(0)
    k_x, k_w1, k_b1, k_w2, k_b2 = jax.random.split(key, 5)

    features = jax.random.normal(k_x, (B, S, H), dtype=jnp.float32)

    # Deterministic PyTorch-style Linear init: U(-1/sqrt(fan_in), 1/sqrt(fan_in)).
    bound1 = 1.0 / (H ** 0.5)
    w_dense = jax.random.uniform(k_w1, (H, H), jnp.float32, -bound1, bound1)
    b_dense = jax.random.uniform(k_b1, (H,), jnp.float32, -bound1, bound1)
    w_out = jax.random.uniform(k_w2, (L, H), jnp.float32, -bound1, bound1)
    b_out = jax.random.uniform(k_b2, (L,), jnp.float32, -bound1, bound1)

    out = regression_head(features, w_dense, b_dense, w_out, b_out)
    out = jax.block_until_ready(out)

    # Reference in plain JAX (dropout = identity at inference).
    ref = jnp.tanh(features @ w_dense.T + b_dense) @ w_out.T + b_out
    assert out.shape == (B, S, L)
    assert jnp.allclose(out, ref, atol=1e-5, rtol=1e-5)

    print("KERNEL_OK")
</pallas_src>

<mosaic_0001>
module attributes {stable_mosaic.version = 11 : i64} {
  func.func @regression_head_kernel(%arg0: i32, %arg1: memref<16x32xf32, #tpu.memory_space<vmem>>, %arg2: memref<32x32xf32, #tpu.memory_space<vmem>>, %arg3: memref<1x32xf32, #tpu.memory_space<vmem>>, %arg4: memref<128x32xf32, #tpu.memory_space<vmem>>, %arg5: memref<1x128xf32, #tpu.memory_space<vmem>>, %arg6: memref<16x128xf32, #tpu.memory_space<vmem>>) attributes {dimension_semantics = [#tpu.dimension_semantics<parallel>], iteration_bounds = array<i64: 1>, scalar_prefetch = 0 : i64, scratch_operands = 0 : i64, tpu.core_type = #tpu.core_type<tc>, window_params = [{transform_indices = @transform_0, window_bounds = array<i64: 16, 32>}, {pipeline_mode = #tpu.pipeline_mode<synchronous>, transform_indices = @transform_1, window_bounds = array<i64: 32, 32>}, {pipeline_mode = #tpu.pipeline_mode<synchronous>, transform_indices = @transform_2, window_bounds = array<i64: 1, 32>}, {pipeline_mode = #tpu.pipeline_mode<synchronous>, transform_indices = @transform_3, window_bounds = array<i64: 128, 32>}, {pipeline_mode = #tpu.pipeline_mode<synchronous>, transform_indices = @transform_4, window_bounds = array<i64: 1, 128>}, {transform_indices = @transform_5, window_bounds = array<i64: 16, 128>}]} {
    %c0 = arith.constant 0 : index
    %c0_0 = arith.constant 0 : index
    %0 = vector.load %arg1[%c0, %c0_0] : memref<16x32xf32, #tpu.memory_space<vmem>>, vector<16x32xf32>
    %c0_1 = arith.constant 0 : index
    %c0_2 = arith.constant 0 : index
    %1 = vector.load %arg2[%c0_1, %c0_2] : memref<32x32xf32, #tpu.memory_space<vmem>>, vector<32x32xf32>
    %cst = arith.constant dense<0.000000e+00> : vector<16x32xf32>
    %2 = tpu.matmul %0, %1, %cst {dimension_numbers = #tpu.dot_dimension_numbers<[1], [1], [0], [0], [0, 0, 1, 0], [], []>} : vector<16x32xf32>, vector<32x32xf32>, vector<16x32xf32> -> vector<16x32xf32>
    %c0_3 = arith.constant 0 : index
    %c0_4 = arith.constant 0 : index
    %3 = vector.load %arg3[%c0_3, %c0_4] : memref<1x32xf32, #tpu.memory_space<vmem>>, vector<1x32xf32>
    %4 = vector.broadcast %3 : vector<1x32xf32> to vector<16x32xf32>
    %5 = arith.addf %2, %4 : vector<16x32xf32>
    %6 = math.tanh %5 : vector<16x32xf32>
    %c0_5 = arith.constant 0 : index
    %c0_6 = arith.constant 0 : index
    %7 = vector.load %arg4[%c0_5, %c0_6] : memref<128x32xf32, #tpu.memory_space<vmem>>, vector<128x32xf32>
    %cst_7 = arith.constant dense<0.000000e+00> : vector<16x128xf32>
    %8 = tpu.matmul %6, %7, %cst_7 {dimension_numbers = #tpu.dot_dimension_numbers<[1], [1], [0], [0], [0, 0, 1, 0], [], []>} : vector<16x32xf32>, vector<128x32xf32>, vector<16x128xf32> -> vector<16x128xf32>
    %c0_8 = arith.constant 0 : index
    %c0_9 = arith.constant 0 : index
    %9 = vector.load %arg5[%c0_8, %c0_9] : memref<1x128xf32, #tpu.memory_space<vmem>>, vector<1x128xf32>
    %10 = vector.broadcast %9 : vector<1x128xf32> to vector<16x128xf32>
    %11 = arith.addf %8, %10 : vector<16x128xf32>
    %c0_10 = arith.constant 0 : index
    %c0_11 = arith.constant 0 : index
    %12 = vector.load %arg6[%c0_10, %c0_11] : memref<16x128xf32, #tpu.memory_space<vmem>>, vector<16x128xf32>
    tpu.vector_store %arg6[%c0_10, %c0_11], %11 {strides = array<i32>} : memref<16x128xf32, #tpu.memory_space<vmem>>, vector<16x128xf32>,
    return
  }
  func.func @transform_0(%arg0: i32) -> (i32, i32) {
    %c0_i32 = arith.constant 0 : i32
    %c0_i32_0 = arith.constant 0 : i32
    return %arg0, %c0_i32 : i32, i32
  }
  func.func @transform_1(%arg0: i32) -> (i32, i32) {
    %c0_i32 = arith.constant 0 : i32
    %c0_i32_0 = arith.constant 0 : i32
    %c0_i32_1 = arith.constant 0 : i32
    return %c0_i32, %c0_i32_0 : i32, i32
  }
  func.func @transform_2(%arg0: i32) -> (i32, i32) {
    %c0_i32 = arith.constant 0 : i32
    %c0_i32_0 = arith.constant 0 : i32
    %c0_i32_1 = arith.constant 0 : i32
    return %c0_i32, %c0_i32_0 : i32, i32
  }
  func.func @transform_3(%arg0: i32) -> (i32, i32) {
    %c0_i32 = arith.constant 0 : i32
    %c0_i32_0 = arith.constant 0 : i32
    %c0_i32_1 = arith.constant 0 : i32
    return %c0_i32, %c0_i32_0 : i32, i32
  }
  func.func @transform_4(%arg0: i32) -> (i32, i32) {
    %c0_i32 = arith.constant 0 : i32
    %c0_i32_0 = arith.constant 0 : i32
    %c0_i32_1 = arith.constant 0 : i32
    return %c0_i32, %c0_i32_0 : i32, i32
  }
  func.func @transform_5(%arg0: i32) -> (i32, i32) {
    %c0_i32 = arith.constant 0 : i32
    %c0_i32_0 = arith.constant 0 : i32
    return %arg0, %c0_i32 : i32, i32
  }
}

</mosaic_0001>

<bundles_post_ra>
// kernel: tpu_custom_call.1
= control target key start
LH: loop header
LB: loop body
LE: loop exit
PB: predicated region body
PF: predicated region fallthrough
CT: control target
= control target key end

     0   :  { %vm31_vm0 = vcmask 261120   ;;  %s415_s0 = inlined_call_operand.vmem [shape: f32[16,32], index: 0, kind: input, shape index: {}]   ;;  %s416_s1 = inlined_call_operand.vmem [shape: f32[32,32], index: 1, kind: input, shape index: {}]   ;;  %s417_s2 = inlined_call_operand.vmem [shape: f32[1,32], index: 2, kind: input, shape index: {}]   ;;  %s418_s3 = inlined_call_operand.vmem [shape: f32[128,32], index: 3, kind: input, shape index: {}]   ;;  %s419_s4 = inlined_call_operand.vmem [shape: f32[1,128], index: 4, kind: input, shape index: {}]   ;;  %s420_s5 = inlined_call_operand.hbm [shape: f32[16,128], index: 5, kind: output, shape index: {}]  }
   0x1   :  { %v26_v0 = vld [vmem:[%s416_s1 + $0x18] sm:$0xff]  ;;  %v25_v1 = vld [vmem:[%s416_s1 + $0x10] sm:$0xff]  ;;  %v24_v4 = vld [vmem:[%s416_s1 + $0x8] sm:$0xff] }
   0x2   :  { %192 = vmatpush.xpose.msk.msra.mxu0 %vm31_vm0, %v26_v0  ;;  %v90_v2 = vld [vmem:[%s418_s3 + $0x78] sm:$0xff]  ;;  %v89_v3 = vld [vmem:[%s418_s3 + $0x70] sm:$0xff] }
   0x3   :  { %198 = vmatpush.xpose.msk.msra.mxu1 %vm31_vm0, %v90_v2  ;;  %216 = vmatpush.xpose.msk.msra.mxu2 %vm31_vm0, %v90_v2 }
   0x6   :  { %193 = vmatpush.xpose.msk.msra.mxu0 %vm31_vm0, %v25_v1 }
   0x7   :  { %10 = vsyncpa [#allocation3], 0  ;;  %199 = vmatpush.xpose.msk.msra.mxu1 %vm31_vm0, %v89_v3  ;;  %217 = vmatpush.xpose.msk.msra.mxu2 %vm31_vm0, %v89_v3  ;;  %v88_v5 = vld [vmem:[%s418_s3 + $0x68] sm:$0xff]  ;;  %v23_v6 = vld [vmem:[%s416_s1] sm:$0xff]  ;;  %s180_s15 = sshll.u32 %s420_s5, 4  ;;  %s268_s16 = smov 128   ;;  %s181_s15 = int_to_ptr.hbm [resolvable:$true] %s180_s15 }
   0x8   :  { %v87_v7 = vld [vmem:[%s418_s3 + $0x60] sm:$0xff]  ;;  %v86_v9 = vld [vmem:[%s418_s3 + $0x58] sm:$0xff]  ;;  %v85_v10 = vld [vmem:[%s418_s3 + $0x50] sm:$0xff]  ;;  %s269_s17 = smov 8  }
   0x9   :  { %v21_v8 = vld [vmem:[%s415_s0] sm:$0xff]  ;;  %v22_v11 = vld [vmem:[%s415_s0 + $0x8] sm:$0xff]  ;;  %v82_v14 = vld [vmem:[%s418_s3 + $0x38] sm:$0xff] }
   0xa   :  { %194 = vmatpush.xpose.msk.msra.mxu0 %vm31_vm0, %v24_v4  ;;  %v84_v12 = vld [vmem:[%s418_s3 + $0x48] sm:$0xff]  ;;  %v83_v13 = vld [vmem:[%s418_s3 + $0x40] sm:$0xff]  ;;  %v81_v15 = vld [vmem:[%s418_s3 + $0x30] sm:$0xff] }
   0xb   :  { %200 = vmatpush.xpose.msk.msra.mxu1 %vm31_vm0, %v88_v5  ;;  %218 = vmatpush.xpose.msk.msra.mxu2 %vm31_vm0, %v88_v5  ;;  %v80_v16 = vld [vmem:[%s418_s3 + $0x28] sm:$0xff]  ;;  %v79_v17 = vld [vmem:[%s418_s3 + $0x20] sm:$0xff]  ;;  %v78_v18 = vld [vmem:[%s418_s3 + $0x18] sm:$0xff] }
   0xc   :  { %v77_v19 = vld [vmem:[%s418_s3 + $0x10] sm:$0xff]  ;;  %v76_v20 = vld [vmem:[%s418_s3 + $0x8] sm:$0xff]  ;;  %v75_v21 = vld [vmem:[%s418_s3] sm:$0xff] }
   0xd   :  { %v235_v22 = vld [vmem:[%s417_s2] ss:$0 sm:$0xff]  ;;  %s267_s2 = smov [#allocation2]  }
   0xe   :  { %195 = vmatpush.xpose.msk.msra.mxu0 %vm31_vm0, %v23_v6  ;;  %v236_v29 = vld [vmem:[%s419_s4] ss:$0 sm:$0xff]  ;;  %s178_s12 = sshll.u32 %s267_s2, 4  ;;  %s179_s12 = int_to_ptr.vmem [resolvable:$true] %s178_s12 }
   0xf   :  { %201 = vmatpush.xpose.msk.msra.mxu1 %vm31_vm0, %v87_v7  ;;  %219 = vmatpush.xpose.msk.msra.mxu2 %vm31_vm0, %v87_v7 }
  0x11   :  { %196 = vmatmul.msk.f32.vlgmr.msra.gmra.mxu0 %vm31_vm0, %v21_v8 }
  0x13   :  { %202 = vmatpush.xpose.msk.msra.mxu1 %vm31_vm0, %v86_v9  ;;  %220 = vmatpush.xpose.msk.msra.mxu2 %vm31_vm0, %v86_v9 }
  0x17   :  { %203 = vmatpush.xpose.msk.msra.mxu1 %vm31_vm0, %v85_v10  ;;  %221 = vmatpush.xpose.msk.msra.mxu2 %vm31_vm0, %v85_v10 }
  0x19   :  { %197 = vmatmul.msk.f32.gmra.mxu0 %vm31_vm0, %v22_v11 }
  0x1b   :  { %204 = vmatpush.xpose.msk.msra.mxu1 %vm31_vm0, %v84_v12  ;;  %222 = vmatpush.xpose.msk.msra.mxu2 %vm31_vm0, %v84_v12 }
  0x1f   :  { %205 = vmatpush.xpose.msk.msra.mxu1 %vm31_vm0, %v83_v13  ;;  %223 = vmatpush.xpose.msk.msra.mxu2 %vm31_vm0, %v83_v13 }
  0x23   :  { %206 = vmatpush.xpose.msk.msra.mxu1 %vm31_vm0, %v82_v14  ;;  %224 = vmatpush.xpose.msk.msra.mxu2 %vm31_vm0, %v82_v14 }
  0x27   :  { %207 = vmatpush.xpose.msk.msra.mxu1 %vm31_vm0, %v81_v15  ;;  %225 = vmatpush.xpose.msk.msra.mxu2 %vm31_vm0, %v81_v15 }
  0x2b   :  { %208 = vmatpush.xpose.msk.msra.mxu1 %vm31_vm0, %v80_v16  ;;  %226 = vmatpush.xpose.msk.msra.mxu2 %vm31_vm0, %v80_v16 }
  0x2f   :  { %209 = vmatpush.xpose.msk.msra.mxu1 %vm31_vm0, %v79_v17  ;;  %227 = vmatpush.xpose.msk.msra.mxu2 %vm31_vm0, %v79_v17 }
  0x33   :  { %210 = vmatpush.xpose.msk.msra.mxu1 %vm31_vm0, %v78_v18  ;;  %228 = vmatpush.xpose.msk.msra.mxu2 %vm31_vm0, %v78_v18 }
  0x37   :  { %211 = vmatpush.xpose.msk.msra.mxu1 %vm31_vm0, %v77_v19  ;;  %229 = vmatpush.xpose.msk.msra.mxu2 %vm31_vm0, %v77_v19 }
  0x3b   :  { %212 = vmatpush.xpose.msk.msra.mxu1 %vm31_vm0, %v76_v20  ;;  %230 = vmatpush.xpose.msk.msra.mxu2 %vm31_vm0, %v76_v20 }
  0x3f   :  { %213 = vmatpush.xpose.msk.msra.mxu1 %vm31_vm0, %v75_v21  ;;  %231 = vmatpush.xpose.msk.msra.mxu2 %vm31_vm0, %v75_v21 }
  0x8e   :  { %v67_v23 = vpop.f32.mrf.mxu0 }
  0x8f   :  { %v68_v24 = vadd.f32 %v235_v22, %v67_v23 }
  0x91   :  { %237 = vtanh.f32 %v68_v24 }
  0x96   :  { %v70_v25 = vpop.f32.mrf.mxu0 }
  0x97   :  { %v238_v26 = vpop.eup %237  ;;  %v71_v27 = vadd.f32 %v235_v22, %v70_v25 }
  0x98   :  { %214 = vmatmul.msk.f32.vlgmr.msra.gmra.mxu1 %vm31_vm0, %v238_v26 }
  0x99   :  { %239 = vtanh.f32 %v71_v27 }
  0x9f   :  { %v240_v28 = vpop.eup %239 }
  0xa0   :  { %215 = vmatmul.msk.f32.vlgmr.msra.gmra.mxu2 %vm31_vm0, %v240_v28 }
 0x115   :  { %v166_v30 = vpop.f32.mrf.mxu1 }
 0x116   :  { %v167_v31 = vadd.f32 %v236_v29, %v166_v30 }
 0x118   :  { %172 = vst [vmem:[#allocation2] sm:$0xff] %v167_v31 }
 0x123   :  { %v169_v32 = vpop.f32.mrf.mxu2 }
 0x124   :  { %v170_v33 = vadd.f32 %v236_v29, %v169_v32 }
 0x126   :  { %173 = vst [vmem:[#allocation2 + $0x8] sm:$0xff] %v170_v33 }
 0x127   :  { %186 = dma.vmem_to_hbm [thread:$0]  %s179_s12, 256, %s181_s15, [#allocation3], %s268_s16, %s268_s16, %s269_s17  }
 0x128   :  { %265 = dma.done.wait [#allocation3], 256  }
 0x129   :  { %266 = vsyncadd [#allocation3], 4294967040 }
 0x12a   :  { %191 = vsyncpa [#allocation3], 1 }

</bundles_post_ra>
